<compile_context>
chip_gen: v7x
topology: tpu7x:2x2x1
jax: 0.10.0
libtpu: 0.0.40
codegen_flags: <defaults>
</compile_context>

<pallas_src>
import functools
import math

import numpy as np

import jax
import jax.numpy as jnp
from jax import lax
from jax.experimental import pallas as pl
from jax.experimental.pallas import tpu as pltpu

LANE = 128                       # vreg lane width; last dim of 2-D tiles
FLAT_SLAB_ROWS = 128             # in-kernel reduction slab (bounds vreg live range)
STAGE_BYTES = 12 * 1024 * 1024   # combined input bytes per pipeline stage (flat kernel)
FUSED_STAGE_BYTES = 8 * 1024 * 1024
RAGGED_CHUNK = 1024              # 1-D blocks stay multiples of 8*128 elements
RAGGED_STAGE_BYTES = 3 * 512 * 1024
VMEM_LIMIT = 32 * 1024 * 1024    # raised above v5e's 16 MiB default; fits v7x's 64 MiB


def _round_up(a, m):
    return ((a + m - 1) // m) * m


def _cdiv(a, b):
    return (a + b - 1) // b


# ---------------------------------------------------------------------------
# Flat kernel (pv.ndim <= 4, n % 128 == 0): grid = (splits, tiles_per_split).
# Leading axis is "parallel" (2 TensorCores on v7x), inner axis is the
# reduction.  Output is a lane-dense resident (8, 128) f32 block per split.
# ---------------------------------------------------------------------------
def _l1_flat_kernel(x_ref, y_ref, w_ref, o_ref, *, nrows, tile_rows,
                    tiles_per_split, total_tiles, need_mask):
    c = pl.program_id(0)
    i = pl.program_id(1)

    @pl.when(i == 0)
    def _init():
        o_ref[...] = jnp.zeros_like(o_ref)

    tile_idx = c * tiles_per_split + i
    row0 = tile_idx * tile_rows

    n_slabs = tile_rows // FLAT_SLAB_ROWS
    rem_rows = tile_rows - n_slabs * FLAT_SLAB_ROWS

    def _chunk(start, rows, acc, masked):
        xs = x_ref[pl.ds(start, rows), :].astype(jnp.float32)
        ys = y_ref[pl.ds(start, rows), :].astype(jnp.float32)
        ws = w_ref[pl.ds(start, rows), :].astype(jnp.float32)
        d = jnp.abs(xs - ys) * ws
        if masked:
            r = row0 + start + lax.broadcasted_iota(jnp.int32, (rows, 1), 0)
            # select (not multiply): OOB garbage / NaN is discarded, not propagated.
            d = jnp.where(r < nrows, d, 0.0)
        return acc + d.reshape(-1, 8, LANE).sum(axis=0)

    def _accumulate(masked):
        acc = jnp.zeros((8, LANE), jnp.float32)
        if n_slabs > 0:
            def body(s, a):
                start = pl.multiple_of(s * FLAT_SLAB_ROWS, FLAT_SLAB_ROWS)
                return _chunk(start, FLAT_SLAB_ROWS, a, masked)
            acc = lax.fori_loop(0, n_slabs, body, acc)
        if rem_rows > 0:
            acc = _chunk(n_slabs * FLAT_SLAB_ROWS, rem_rows, acc, masked)
        o_ref[...] += acc

    if not need_mask:
        _accumulate(False)
    else:
        # Mask only the last real tile and the (clamped) overhang steps.
        @pl.when(tile_idx < total_tiles - 1)
        def _fast():
            _accumulate(False)

        @pl.when(tile_idx >= total_tiles - 1)
        def _masked():
            _accumulate(True)


def _l1_flat2d(xr, yr, wr, n):
    nrows = n // LANE
    x2 = xr.reshape(nrows, LANE)      # metadata-only: n % 128 == 0
    y2 = yr.reshape(nrows, LANE)
    w2 = wr.reshape(nrows, LANE)

    bytes_per_row = LANE * (x2.dtype.itemsize + y2.dtype.itemsize + w2.dtype.itemsize)
    tile_rows = max(8, (STAGE_BYTES // bytes_per_row) // 8 * 8)
    tile_rows = min(tile_rows, _round_up(nrows, 8))
    total_tiles = _cdiv(nrows, tile_rows)
    splits = 2 if total_tiles >= 2 else 1          # unconditional 2-TC split on v7x
    tiles_per_split = _cdiv(total_tiles, splits)
    need_mask = (nrows % tile_rows != 0) or (splits * tiles_per_split != total_tiles)

    def row_map(c, i):
        # Clamp the overhang step (odd tile counts) to the last valid tile; its
        # contribution is zeroed in-kernel by the row mask.
        return (jnp.minimum(c * tiles_per_split + i, total_tiles - 1), 0)

    kernel = functools.partial(
        _l1_flat_kernel, nrows=nrows, tile_rows=tile_rows,
        tiles_per_split=tiles_per_split, total_tiles=total_tiles,
        need_mask=need_mask)

    partials = pl.pallas_call(
        kernel,
        out_shape=jax.ShapeDtypeStruct((splits * 8, LANE), jnp.float32),
        grid=(splits, tiles_per_split),
        in_specs=[pl.BlockSpec((tile_rows, LANE), row_map)] * 3,
        out_specs=pl.BlockSpec((8, LANE), lambda c, i: (c, 0)),
        compiler_params=pltpu.CompilerParams(
            dimension_semantics=("parallel", "arbitrary"),
            vmem_limit_bytes=VMEM_LIMIT),
        cost_estimate=pl.CostEstimate(
            flops=3 * n, transcendentals=0,
            bytes_accessed=nrows * bytes_per_row),
    )(x2, y2, w2)
    return jnp.sum(partials)


# ---------------------------------------------------------------------------
# Ragged kernel (n % 128 != 0): the full 1-D ravel is streamed with 1-D blocks
# (no wrapper-side slice/pad copy).  Only whole blocks are gridded; the
# bounded remainder is summed in a tiny XLA epilogue.
# ---------------------------------------------------------------------------
def _l1_ragged_kernel(x_ref, y_ref, w_ref, o_ref):
    @pl.when(pl.program_id(0) == 0)
    def _init():
        o_ref[...] = jnp.zeros_like(o_ref)
    x = x_ref[...].astype(jnp.float32)
    y = y_ref[...].astype(jnp.float32)
    w = w_ref[...].astype(jnp.float32)
    o_ref[...] += jnp.abs(x - y) * w


def _l1_ragged(xr, yr, wr, n):
    combined = xr.dtype.itemsize + yr.dtype.itemsize + wr.dtype.itemsize
    target = max(RAGGED_CHUNK,
                 (RAGGED_STAGE_BYTES // combined) // RAGGED_CHUNK * RAGGED_CHUNK)
    block_elems = min(target, (n // RAGGED_CHUNK) * RAGGED_CHUNK)

    total = jnp.float32(0.0)
    covered = 0
    if block_elems >= RAGGED_CHUNK:
        num_blocks = n // block_elems
        covered = num_blocks * block_elems
        partial = pl.pallas_call(
            _l1_ragged_kernel,
            out_shape=jax.ShapeDtypeStruct((block_elems,), jnp.float32),
            grid=(num_blocks,),
            in_specs=[pl.BlockSpec((block_elems,), lambda i: (i,))] * 3,
            out_specs=pl.BlockSpec((block_elems,), lambda i: (0,)),
            compiler_params=pltpu.CompilerParams(
                dimension_semantics=("arbitrary",),
                vmem_limit_bytes=VMEM_LIMIT),
            cost_estimate=pl.CostEstimate(
                flops=3 * covered, transcendentals=0,
                bytes_accessed=covered * combined),
        )(xr, yr, wr)
        total = total + jnp.sum(partial)

    if covered < n:
        # TODO(synk): bounded (< block + 1024 element) remainder is summed in
        # plain XLA; folding it into the kernel would need a masked 1-D iota
        # for no measurable gain.
        xt = xr[covered:].astype(jnp.float32)
        yt = yr[covered:].astype(jnp.float32)
        wt = wr[covered:].astype(jnp.float32)
        total = total + jnp.sum(jnp.abs(xt - yt) * wt)
    return total


def _l1_weighted_sum(x, y, pv):
    """sum(|x.flatten() - y.flatten()| * pv.flatten()) via Pallas kernels."""
    n = x.size
    if n == 0:
        return jnp.float32(0.0)
    xr = jnp.ravel(x)
    yr = jnp.ravel(y)
    wr = jnp.ravel(pv)
    if n % LANE == 0:
        return _l1_flat2d(xr, yr, wr, n)
    return _l1_ragged(xr, yr, wr, n)


# ---------------------------------------------------------------------------
# Fused kernel for pv.ndim > 4: x, y viewed as (d0*d1, C), pv as (d0*d1, d2*C);
# only the used n_slices*C columns of pv are DMA'd, |x - y| is computed once
# per slab and multiplied against the in-register sum of the weight slices.
# ---------------------------------------------------------------------------
def _l1_multi_kernel(x_ref, y_ref, pv_ref, o_ref, *, nrows, tile_rows, ncols,
                     n_slices, slab_rows, tiles_per_split, total_tiles,
                     need_mask):
    c = pl.program_id(0)
    i = pl.program_id(1)

    @pl.when(i == 0)
    def _init():
        o_ref[...] = jnp.zeros_like(o_ref)

    tile_idx = c * tiles_per_split + i
    row0 = tile_idx * tile_rows

    n_slabs = tile_rows // slab_rows
    rem_rows = tile_rows - n_slabs * slab_rows

    def _chunk(start, rows, acc, masked):
        xs = x_ref[pl.ds(start, rows), :].astype(jnp.float32)
        ys = y_ref[pl.ds(start, rows), :].astype(jnp.float32)
        d = jnp.abs(xs - ys)
        # sum_s |x-y| * pv_s == |x-y| * sum_s pv_s ; lane-aligned static slices.
        w = pv_ref[pl.ds(start, rows), pl.ds(0, ncols)].astype(jnp.float32)
        for s in range(1, n_slices):
            w = w + pv_ref[pl.ds(start, rows),
                           pl.ds(s * ncols, ncols)].astype(jnp.float32)
        p = d * w
        if masked:
            r = row0 + start + lax.broadcasted_iota(jnp.int32, (rows, 1), 0)
            p = jnp.where(r < nrows, p, 0.0)
        return acc + p.reshape(-1, 8, ncols).sum(axis=0)

    def _accumulate(masked):
        acc = jnp.zeros((8, ncols), jnp.float32)
        if n_slabs > 0:
            def body(s, a):
                start = pl.multiple_of(s * slab_rows, slab_rows)
                return _chunk(start, slab_rows, a, masked)
            acc = lax.fori_loop(0, n_slabs, body, acc)
        if rem_rows > 0:
            acc = _chunk(n_slabs * slab_rows, rem_rows, acc, masked)
        o_ref[...] += acc

    if not need_mask:
        _accumulate(False)
    else:
        @pl.when(tile_idx < total_tiles - 1)
        def _fast():
            _accumulate(False)

        @pl.when(tile_idx >= total_tiles - 1)
        def _masked():
            _accumulate(True)


def _l1_weighted_sum_fused(x, y, pv):
    d0, d1, d2 = pv.shape[0], pv.shape[1], pv.shape[2]
    ncols = math.prod(pv.shape[3:])
    nrows = d0 * d1
    n_slices = d1                  # mirrors `for i in range(pv.size()[1])`

    if n_slices > d2:
        # PyTorch would raise IndexError on pv[:, :, i]; do not silently clamp.
        raise ValueError(
            f"pv.shape[1]={n_slices} > pv.shape[2]={d2}: index out of range")

    slice_size = nrows * ncols
    if ncols == 0 or slice_size != x.size or ncols % LANE != 0:
        # Lane-misaligned / incompatible layouts: per-slice fallback (each
        # pv[:, :, i] slice is materialized once by XLA, then streamed through
        # the optimized flat kernel).
        total = jnp.float32(0.0)
        for i in range(n_slices):
            total = total + _l1_weighted_sum(x, y, pv[:, :, i])
        return total

    x2 = jnp.ravel(x).reshape(nrows, ncols)
    y2 = jnp.ravel(y).reshape(nrows, ncols)
    pv2 = jnp.reshape(pv, (nrows, d2 * ncols))     # metadata-only
    used_cols = n_slices * ncols                   # multiple of 128: only these are DMA'd

    bytes_per_row = (ncols * (x2.dtype.itemsize + y2.dtype.itemsize)
                     + used_cols * pv2.dtype.itemsize)
    tile_rows = max(8, (FUSED_STAGE_BYTES // bytes_per_row) // 8 * 8)
    tile_rows = min(tile_rows, _round_up(nrows, 8))
    # Slab rows sized so per-slab values stay ~a few dozen vregs.
    slab_rows = max(8, min(64, (8192 // max(ncols, 1)) // 8 * 8))
    total_tiles = _cdiv(nrows, tile_rows)
    splits = 2 if total_tiles >= 2 else 1
    tiles_per_split = _cdiv(total_tiles, splits)
    need_mask = (nrows % tile_rows != 0) or (splits * tiles_per_split != total_tiles)

    def row_map(c, i):
        return (jnp.minimum(c * tiles_per_split + i, total_tiles - 1), 0)

    kernel = functools.partial(
        _l1_multi_kernel, nrows=nrows, tile_rows=tile_rows, ncols=ncols,
        n_slices=n_slices, slab_rows=slab_rows,
        tiles_per_split=tiles_per_split, total_tiles=total_tiles,
        need_mask=need_mask)

    out = pl.pallas_call(
        kernel,
        out_shape=jax.ShapeDtypeStruct((splits * 8, ncols), jnp.float32),
        grid=(splits, tiles_per_split),
        in_specs=[
            pl.BlockSpec((tile_rows, ncols), row_map),
            pl.BlockSpec((tile_rows, ncols), row_map),
            pl.BlockSpec((tile_rows, used_cols), row_map),
        ],
        out_specs=pl.BlockSpec((8, ncols), lambda c, i: (c, 0)),
        compiler_params=pltpu.CompilerParams(
            dimension_semantics=("parallel", "arbitrary"),
            vmem_limit_bytes=VMEM_LIMIT),
        cost_estimate=pl.CostEstimate(
            flops=(3 + n_slices) * nrows * ncols, transcendentals=0,
            bytes_accessed=nrows * bytes_per_row),
    )(x2, y2, pv2)
    return jnp.sum(out)


@jax.jit
def l1_lossv2(x, y, pv):
    """Forward pass of L1_Lossv2 (no parameters)."""
    if pv.ndim > 4:
        return _l1_weighted_sum_fused(x, y, pv)
    return _l1_weighted_sum(x, y, pv)


# ---------------------------------------------------------------------------
# Testing helpers: float64 numpy reference + condition-number-aware tolerance.
# ---------------------------------------------------------------------------
def _to_f64(a):
    return np.asarray(jnp.asarray(a, jnp.float32)).astype(np.float64)


def _reference_f64(x, y, pv):
    d = np.abs(_to_f64(x).ravel() - _to_f64(y).ravel())
    if pv.ndim > 4:
        loss, scale = 0.0, 0.0
        for i in range(pv.shape[1]):
            t = _to_f64(pv[:, :, i]).ravel()
            loss += float(np.sum(d * t))
            scale += float(np.sum(np.abs(d * t)))
        return loss, scale
    t = _to_f64(pv).ravel()
    return float(np.sum(d * t)), float(np.sum(np.abs(d * t)))


def _check(name, out, x, y, pv):
    ref, scale = _reference_f64(x, y, pv)
    tol = 1e-5 * scale + 1e-2
    err = abs(float(out) - ref)
    assert err <= tol, (name, float(out), ref, err, tol)


if __name__ == "__main__":
    key = jax.random.PRNGKey(0)
    ks = jax.random.split(key, 13)

    # 1) pv.ndim == 4, f32, lane-aligned flat size (n = 2048).
    x = jax.random.normal(ks[0], (2, 4, 16, 16), jnp.float32)
    y = jax.random.normal(ks[1], (2, 4, 16, 16), jnp.float32)
    pv4 = jax.random.normal(ks[2], (2, 4, 16, 16), jnp.float32)
    out = jax.block_until_ready(l1_lossv2(x, y, pv4))
    _check("ndim4_f32", out, x, y, pv4)

    # 2) bf16 inputs stay bf16 in HBM (upcast to f32 in-register).
    xb, yb, pvb = (a.astype(jnp.bfloat16) for a in (x, y, pv4))
    out = jax.block_until_ready(l1_lossv2(xb, yb, pvb))
    _check("ndim4_bf16", out, xb, yb, pvb)

    # 3) pv.ndim == 5, fused path, every pv slice used.
    pv5 = jax.random.normal(ks[3], (2, 4, 4, 16, 16), jnp.float32)
    out = jax.block_until_ready(l1_lossv2(x, y, pv5))
    _check("ndim5_full", out, x, y, pv5)

    # 4) pv.ndim == 5 with unused trailing slices (d2 > d1) + partial row tile.
    x5 = jax.random.normal(ks[4], (4, 3, 8, 32), jnp.float32)
    y5 = jax.random.normal(ks[5], (4, 3, 8, 32), jnp.float32)
    pv5b = jax.random.normal(ks[6], (4, 3, 5, 8, 32), jnp.float32)
    out = jax.block_until_ready(l1_lossv2(x5, y5, pv5b))
    _check("ndim5_partial", out, x5, y5, pv5b)

    # 5) Large flat case (3 row tiles): exercises the 2-TensorCore split, the
    #    clamped overhang tile and the in-kernel slab loop.
    xl = jax.random.normal(ks[7], (3, 128, 128, 64), jnp.float32)
    yl = jax.random.normal(ks[8], (3, 128, 128, 64), jnp.float32)
    pvl = jax.random.normal(ks[9], (3, 128, 128, 64), jnp.float32)
    out = jax.block_until_ready(l1_lossv2(xl, yl, pvl))
    _check("ndim4_large", out, xl, yl, pvl)

    # 6) Ragged flat size (n % 128 != 0): copy-free 1-D kernel + bounded tail.
    xr = jax.random.normal(ks[10], (515, 515), jnp.float32)
    yr = jax.random.normal(ks[11], (515, 515), jnp.float32)
    pvr = jax.random.normal(ks[12], (515, 515), jnp.float32)
    out = jax.block_until_ready(l1_lossv2(xr, yr, pvr))
    _check("ragged", out, xr, yr, pvr)

    print("KERNEL_OK")
</pallas_src>

<mosaic_0001>
module attributes {stable_mosaic.version = 11 : i64} {
  func.func @_l1_flat_kernel(%arg0: i32, %arg1: i32, %arg2: memref<16x128xf32, #tpu.memory_space<vmem>>, %arg3: memref<16x128xf32, #tpu.memory_space<vmem>>, %arg4: memref<16x128xf32, #tpu.memory_space<vmem>>, %arg5: memref<8x128xf32, #tpu.memory_space<vmem>>) attributes {dimension_semantics = [#tpu.dimension_semantics<parallel>, #tpu.dimension_semantics<arbitrary>], iteration_bounds = array<i64: 1, 1>, scalar_prefetch = 0 : i64, scratch_operands = 0 : i64, tpu.core_type = #tpu.core_type<tc>, window_params = [{transform_indices = @transform_0, window_bounds = array<i64: 16, 128>}, {transform_indices = @transform_1, window_bounds = array<i64: 16, 128>}, {transform_indices = @transform_2, window_bounds = array<i64: 16, 128>}, {transform_indices = @transform_3, window_bounds = array<i64: 8, 128>}]} {
    %c0_i32 = arith.constant 0 : i32
    %0 = arith.cmpi eq, %arg1, %c0_i32 : i32
    %1 = arith.extui %0 : i1 to i32
    %c0_i32_0 = arith.constant 0 : i32
    %2 = arith.cmpi ne, %1, %c0_i32_0 : i32
    scf.if %2 {
      %cst_11 = arith.constant 0.000000e+00 : f32
      %16 = vector.broadcast %cst_11 : f32 to vector<8x128xf32>
      %c0_12 = arith.constant 0 : index
      %c0_13 = arith.constant 0 : index
      %17 = vector.load %arg5[%c0_12, %c0_13] : memref<8x128xf32, #tpu.memory_space<vmem>>, vector<8x128xf32>
      tpu.vector_store %arg5[%c0_12, %c0_13], %16 {strides = array<i32>} : memref<8x128xf32, #tpu.memory_space<vmem>>, vector<8x128xf32>,
    } else {
    }
    %cst = arith.constant 0.000000e+00 : f32
    %3 = vector.broadcast %cst : f32 to vector<8x128xf32>
    %c0 = arith.constant 0 : index
    %c0_1 = arith.constant 0 : index
    %4 = vector.load %arg2[%c0, %c0_1] : memref<16x128xf32, #tpu.memory_space<vmem>>, vector<16x128xf32>
    %c0_2 = arith.constant 0 : index
    %c0_3 = arith.constant 0 : index
    %5 = vector.load %arg3[%c0_2, %c0_3] : memref<16x128xf32, #tpu.memory_space<vmem>>, vector<16x128xf32>
    %c0_4 = arith.constant 0 : index
    %c0_5 = arith.constant 0 : index
    %6 = vector.load %arg4[%c0_4, %c0_5] : memref<16x128xf32, #tpu.memory_space<vmem>>, vector<16x128xf32>
    %7 = arith.subf %4, %5 : vector<16x128xf32>
    %8 = math.absf %7 : vector<16x128xf32>
    %9 = arith.mulf %8, %6 : vector<16x128xf32>
    %10 = vector.shape_cast %9 : vector<16x128xf32> to vector<2x8x128xf32>
    %cst_6 = arith.constant dense<0.000000e+00> : vector<8x128xf32>
    %11 = vector.multi_reduction <add>, %10, %cst_6 [0] : vector<2x8x128xf32> to vector<8x128xf32>
    %12 = arith.addf %3, %11 : vector<8x128xf32>
    %c0_7 = arith.constant 0 : index
    %c0_8 = arith.constant 0 : index
    %13 = vector.load %arg5[%c0_7, %c0_8] : memref<8x128xf32, #tpu.memory_space<vmem>>, vector<8x128xf32>
    %14 = arith.addf %13, %12 : vector<8x128xf32>
    %c0_9 = arith.constant 0 : index
    %c0_10 = arith.constant 0 : index
    %15 = vector.load %arg5[%c0_9, %c0_10] : memref<8x128xf32, #tpu.memory_space<vmem>>, vector<8x128xf32>
    tpu.vector_store %arg5[%c0_9, %c0_10], %14 {strides = array<i32>} : memref<8x128xf32, #tpu.memory_space<vmem>>, vector<8x128xf32>,
    return
  }
  func.func @transform_0(%arg0: i32, %arg1: i32) -> (i32, i32) {
    %c1_i32 = arith.constant 1 : i32
    %0 = arith.muli %arg0, %c1_i32 : i32
    %1 = arith.addi %0, %arg1 : i32
    %c0_i32 = arith.constant 0 : i32
    %2 = arith.minsi %1, %c0_i32 : i32
    %c0_i32_0 = arith.constant 0 : i32
    %c0_i32_1 = arith.constant 0 : i32
    return %2, %c0_i32_0 : i32, i32
  }
  func.func @transform_1(%arg0: i32, %arg1: i32) -> (i32, i32) {
    %c1_i32 = arith.constant 1 : i32
    %0 = arith.muli %arg0, %c1_i32 : i32
    %1 = arith.addi %0, %arg1 : i32
    %c0_i32 = arith.constant 0 : i32
    %2 = arith.minsi %1, %c0_i32 : i32
    %c0_i32_0 = arith.constant 0 : i32
    %c0_i32_1 = arith.constant 0 : i32
    return %2, %c0_i32_0 : i32, i32
  }
  func.func @transform_2(%arg0: i32, %arg1: i32) -> (i32, i32) {
    %c1_i32 = arith.constant 1 : i32
    %0 = arith.muli %arg0, %c1_i32 : i32
    %1 = arith.addi %0, %arg1 : i32
    %c0_i32 = arith.constant 0 : i32
    %2 = arith.minsi %1, %c0_i32 : i32
    %c0_i32_0 = arith.constant 0 : i32
    %c0_i32_1 = arith.constant 0 : i32
    return %2, %c0_i32_0 : i32, i32
  }
  func.func @transform_3(%arg0: i32, %arg1: i32) -> (i32, i32) {
    %c0_i32 = arith.constant 0 : i32
    %c0_i32_0 = arith.constant 0 : i32
    return %arg0, %c0_i32 : i32, i32
  }
}

</mosaic_0001>

<bundles_post_ra>
// kernel: l1_lossv2.1
= control target key start
LH: loop header
LB: loop body
LE: loop exit
PB: predicated region body
PF: predicated region fallthrough
CT: control target
= control target key end

     0   :  { %s196_s0 = inlined_call_operand.vmem [shape: f32[16,128], index: 0, kind: input, shape index: {}]   ;;  %s197_s1 = inlined_call_operand.vmem [shape: f32[16,128], index: 1, kind: input, shape index: {}]   ;;  %s198_s2 = inlined_call_operand.vmem [shape: f32[16,128], index: 2, kind: input, shape index: {}]   ;;  %s199_s3 = inlined_call_operand.vmem [shape: f32[8,128], index: 3, kind: output, shape index: {}]  }
   0x1   :  { %v115_v0 = vld [vmem:[%s196_s0] sm:$0xff]  ;;  %v116_v1 = vld [vmem:[%s196_s0 + $0x8] sm:$0xff] }
   0x2   :  { %v117_v2 = vld [vmem:[%s197_s1] sm:$0xff]  ;;  %v118_v3 = vld [vmem:[%s197_s1 + $0x8] sm:$0xff] }
   0x3   :  { %v121_v4 = vsub.f32 %v115_v0, %v117_v2  ;;  %v119_v5 = vld [vmem:[%s198_s2] sm:$0xff]  ;;  %v122_v6 = vsub.f32 %v116_v1, %v118_v3  ;;  %v120_v7 = vld [vmem:[%s198_s2 + $0x8] sm:$0xff] }
   0x5   :  { %v123_v8 = vand.u32 2147483647, %v121_v4  ;;  %v124_v9 = vand.u32 2147483647, %v122_v6 }
   0x7   :  { %v125_v10 = vmul.f32 %v123_v8, %v119_v5  ;;  %v126_v11 = vmul.f32 %v124_v9, %v120_v7 }
   0x9   :  { %v127_v12 = vadd.f32 %v126_v11, %v125_v10 }
   0xb   :  { %131 = vst [vmem:[%s199_s3] sm:$0xff] %v127_v12 }

</bundles_post_ra>
